<compile_context>
chip_gen: v6e
topology: v6e:2x2x1
jax: 0.10.0
libtpu: 0.0.40
codegen_flags: <defaults>
</compile_context>

<pallas_src>
import functools

import jax
import jax.numpy as jnp
from jax.experimental import pallas as pl
from jax.experimental.pallas import tpu as pltpu


def xrnn_kernel(
    x0_ref, h_ref,
    w1_ref, b1_ref,
    wih_ref, whh_ref, brz_ref, bin_ref, bhn_ref,
    wenc_ref, benc_ref,
    wqk_ref,
    wout_ref, bout_ref,
    w2a_ref, w2b_ref, b2_ref,
    slab_ref,
    *, n_agents, mxu_dtype,
):
    f32 = jnp.float32
    x0 = x0_ref[...].astype(f32)        # (R, e)  R = rows = batches*agents in tile
    h_prev = h_ref[...].astype(f32)     # (R, H)
    R = x0.shape[0]
    H = h_prev.shape[1]
    A = b2_ref.shape[1]                 # n_actions
    E = benc_ref.shape[1]               # obs_enc_dim

    def mm(act_c, w_ref):               # MXU matmul, f32 accumulation
        return jnp.dot(act_c, w_ref[...], preferred_element_type=f32)

    x0_c = x0.astype(mxu_dtype)

    # ---- alive-agent / same-batch masks (pure VPU; no MXU outer product) ----
    # NOTE: the reference literally uses (sum(features) > 0) as "alive".
    alive_r = (jnp.sum(x0, axis=1, keepdims=True) > 0.0).astype(f32)   # (R, 1)
    alive_c = jnp.transpose(alive_r)                                    # (1, R)
    inv_a = 1.0 / float(n_agents)
    rid = jax.lax.broadcasted_iota(jnp.int32, (R, 1), 0).astype(f32)
    cid = jax.lax.broadcasted_iota(jnp.int32, (1, R), 1).astype(f32)
    rbatch = jnp.floor((rid + 0.5) * inv_a)
    cbatch = jnp.floor((cid + 0.5) * inv_a)
    mask = (rbatch == cbatch) & (alive_r > 0.5) & (alive_c > 0.5)       # (R, R)

    # ---- fc1 + ReLU ----
    x = jnp.maximum(mm(x0_c, w1_ref) + b1_ref[...], 0.0)                # (R, H)

    # ---- GRUCell (PyTorch gate order r, z, n; r/z biases pre-summed) ----
    h_prev_c = h_prev.astype(mxu_dtype)
    gi = mm(x.astype(mxu_dtype), wih_ref)                               # (R, 3H)
    gh = mm(h_prev_c, whh_ref)                                          # (R, 3H)
    rz = jax.nn.sigmoid(gi[:, :2 * H] + gh[:, :2 * H] + brz_ref[...])
    r, zg = rz[:, :H], rz[:, H:]
    n = jnp.tanh(gi[:, 2 * H:] + bin_ref[...] + r * (gh[:, 2 * H:] + bhn_ref[...]))
    h = (1.0 - zg) * n + zg * h_prev                                    # (R, H)
    h_c = h.astype(mxu_dtype)

    # ---- obs encoder (Linear + ReLU) ----
    enc = jnp.maximum(mm(h_c, wenc_ref) + benc_ref[...], 0.0)           # (R, E)
    enc_c = enc.astype(mxu_dtype)

    # ---- agent-agent attention over the whole tile in one matmul ----
    # s = (enc @ Wq^T) @ (enc @ Wk^T)^T == enc @ (Wq^T Wk) @ enc^T ; the inner
    # (E,E) product is folded into wqk on the host.
    tmp = mm(enc_c, wqk_ref)                                            # (R, E)
    s = jax.lax.dot_general(tmp.astype(mxu_dtype), enc_c,
                            (((1,), (1,)), ((), ())),
                            preferred_element_type=f32)                 # (R, R)
    scale = 1.0 / (float(E) ** 0.5)
    logits = jnp.where(mask, s * scale, -1e10)
    m = jnp.max(logits, axis=1, keepdims=True)
    p = jnp.exp(logits - m)
    denom = jnp.sum(p, axis=1, keepdims=True)
    attn = p * pl.reciprocal(denom, approx=True)
    adj = jnp.where(mask, attn, 0.0)          # block-diagonal adjacency (R, R)

    # ---- mixing_GNN: adjacency-weighted aggregation of raw inputs ----
    # TODO(synk): mixing_GNN is undefined in the reference; bmm(adj, input0).
    mixed = jnp.dot(adj.astype(mxu_dtype), x0_c,
                    preferred_element_type=f32)                         # (R, e)

    # ---- fc_out + ReLU ----
    out = jnp.maximum(mm(mixed.astype(mxu_dtype), wout_ref) + bout_ref[...], 0.0)

    # ---- fc2 on concat(out, h): two matmuls summed (no lane concat) ----
    q = mm(out.astype(mxu_dtype), w2a_ref) + mm(h_c, w2b_ref) + b2_ref[...]

    # ---- packed, lane-dense output slab: [ q | h | z(=out) | zero pad ] ----
    slab_ref[:, 0:A] = q.astype(slab_ref.dtype)
    slab_ref[:, A:A + H] = h.astype(slab_ref.dtype)
    slab_ref[:, A + H:A + 2 * H] = out.astype(slab_ref.dtype)
    pad = slab_ref.shape[1] - (A + 2 * H)
    if pad > 0:
        slab_ref[:, A + 2 * H:] = jnp.zeros((R, pad), slab_ref.dtype)


def _choose_row_tile(total_rows, n_agents, target=256):
    """Largest row tile that is a multiple of n_agents, divides total_rows and
    is sublane aligned (multiple of 8, or the full array).  For small problems
    the target is halved so the grid has >= 2 steps (v7x dual-core balance)."""
    if total_rows <= target:
        target = max(n_agents, total_rows // 2)
    best = total_rows
    for t in range(n_agents, total_rows + 1, n_agents):
        if t > target:
            break
        if total_rows % t:
            continue
        if t % 8 and t != total_rows:
            continue
        best = t
    return best


def xrnn_agent_forward(inputs, hidden, params, *, mxu_dtype=jnp.bfloat16,
                       row_tile=None):
    """inputs: (b, a, e) f32; hidden: (b, a, H) f32; params: dict of arrays."""
    b, a, e = inputs.shape
    H = hidden.shape[-1]
    A = params["b2"].shape[-1]
    total = b * a

    x0 = inputs.reshape(total, e).astype(jnp.float32)
    h0 = hidden.reshape(total, H).astype(jnp.float32)

    rt = row_tile if row_tile is not None else _choose_row_tile(total, a)
    assert total % rt == 0 and rt % a == 0
    grid = (total // rt,)

    wc = lambda w: w.astype(mxu_dtype)          # MXU operands in bf16
    weights = [
        wc(params["w1"]), params["b1"],
        wc(params["wih"]), wc(params["whh"]),
        (params["bih"] + params["bhh"])[:, :2 * H],     # pre-summed r/z bias
        params["bih"][:, 2 * H:], params["bhh"][:, 2 * H:],
        wc(params["wenc"]), params["benc"],
        wc(params["wq"] @ params["wk"].T),              # folded Wq^T Wk
        wc(params["wout"]), params["bout"],
        wc(params["w2"][:H]), wc(params["w2"][H:]), params["b2"],
    ]

    pack = max(128, ((A + 2 * H + 127) // 128) * 128)   # lane-dense output slab

    def rows_spec(width):
        return pl.BlockSpec((rt, width), lambda i: (i, 0))

    def full_spec(arr):
        return pl.BlockSpec(arr.shape, lambda i: (0, 0))

    kernel = functools.partial(xrnn_kernel, n_agents=a, mxu_dtype=mxu_dtype)

    slab = pl.pallas_call(
        kernel,
        grid=grid,
        in_specs=[rows_spec(e), rows_spec(H)] + [full_spec(w) for w in weights],
        out_specs=pl.BlockSpec((rt, pack), lambda i: (i, 0)),
        out_shape=jax.ShapeDtypeStruct((total, pack), jnp.float32),
        compiler_params=pltpu.CompilerParams(
            dimension_semantics=("parallel",)),
    )(x0, h0, *weights)

    q = slab[:, :A].reshape(b, a, A)
    h = slab[:, A:A + H].reshape(b, a, H)
    z = slab[:, A + H:A + 2 * H].reshape(b, a, H)
    return q, h, z


def make_params(key, e, H, E, n_actions):
    """Deterministic synthetic parameters (same roles/shapes as the nn.Module,
    stored pre-transposed as (in, out))."""
    ks = jax.random.split(key, 16)
    s = 0.1

    def rnd(k, shape):
        return jax.random.normal(k, shape, jnp.float32) * s

    return {
        "w1": rnd(ks[0], (e, H)), "b1": rnd(ks[1], (1, H)),
        "wih": rnd(ks[2], (H, 3 * H)), "whh": rnd(ks[3], (H, 3 * H)),
        "bih": rnd(ks[4], (1, 3 * H)), "bhh": rnd(ks[5], (1, 3 * H)),
        "wenc": rnd(ks[6], (H, E)), "benc": rnd(ks[7], (1, E)),
        "wq": rnd(ks[8], (E, E)), "wk": rnd(ks[9], (E, E)),
        "wout": rnd(ks[10], (e, H)), "bout": rnd(ks[11], (1, H)),
        "w2": rnd(ks[12], (2 * H, n_actions)), "b2": rnd(ks[13], (1, n_actions)),
    }


def xrnn_reference(inputs, hidden, params):
    """Plain-JAX f32 reference mirroring the PyTorch module's forward."""
    b, a, e = inputs.shape
    H = hidden.shape[-1]
    x0 = inputs.reshape(-1, e)
    h_prev = hidden.reshape(-1, H)
    alive = (jnp.sum(inputs, axis=2) > 0).astype(jnp.float32)          # (b, a)
    mask = alive[:, :, None] * alive[:, None, :]                        # (b,a,a)
    x = jax.nn.relu(x0 @ params["w1"] + params["b1"])
    gi = x @ params["wih"] + params["bih"]
    gh = h_prev @ params["whh"] + params["bhh"]
    r = jax.nn.sigmoid(gi[:, :H] + gh[:, :H])
    zg = jax.nn.sigmoid(gi[:, H:2 * H] + gh[:, H:2 * H])
    n = jnp.tanh(gi[:, 2 * H:] + r * gh[:, 2 * H:])
    h = (1.0 - zg) * n + zg * h_prev
    enc = jax.nn.relu(h @ params["wenc"] + params["benc"]).reshape(b, a, -1)
    E = enc.shape[-1]
    aq = enc @ params["wq"]
    ak = enc @ params["wk"]
    attn = jnp.einsum("bqe,bke->bqk", aq, ak) / jnp.sqrt(jnp.float32(E))
    attn = jax.nn.softmax(attn + (-1e10) * (1.0 - mask), axis=2)
    adj = attn * mask
    mixed = jnp.einsum("bij,bje->bie", adj, inputs).reshape(-1, e)
    out = jax.nn.relu(mixed @ params["wout"] + params["bout"])
    z = out
    q = jnp.concatenate([out, h], axis=1) @ params["w2"] + params["b2"]
    return q.reshape(b, a, -1), h.reshape(b, a, -1), z.reshape(b, a, -1)


if __name__ == "__main__":
    b = 16           # batch
    n_agents = 4     # a
    e = 16           # per-agent input feature dim
    H = 32           # rnn_hidden_dim
    E = 64           # obs_enc_dim (hard-coded to 64 in the reference module)
    n_actions = 8

    key = jax.random.PRNGKey(0)
    k_in, k_hid, k_par = jax.random.split(key, 3)
    inputs = jax.random.normal(k_in, (b, n_agents, e), jnp.float32)
    hidden = jax.random.normal(k_hid, (b, n_agents, H), jnp.float32) * 0.1
    params = make_params(k_par, e, H, E, n_actions)

    fwd = jax.jit(xrnn_agent_forward)
    q, h, z = fwd(inputs, hidden, params)
    jax.block_until_ready((q, h, z))

    assert q.shape == (b, n_agents, n_actions)
    assert h.shape == (b, n_agents, H)
    assert z.shape == (b, n_agents, H)
    assert bool(jnp.all(jnp.isfinite(q)))
    assert bool(jnp.all(jnp.isfinite(h)))
    assert bool(jnp.all(jnp.isfinite(z)))

    # Numerics check against a plain-JAX f32 reference (bf16 MXU + approx
    # reciprocal => loose tolerance).
    q_ref, h_ref, z_ref = xrnn_reference(inputs, hidden, params)
    for got, ref in ((q, q_ref), (h, h_ref), (z, z_ref)):
        err = float(jnp.max(jnp.abs(got - ref)))
        assert err < 5e-2, f"max abs error too large: {err}"

    print("KERNEL_OK")
</pallas_src>

<mosaic_0001>
module attributes {stable_mosaic.version = 11 : i64} {
  func.func @xrnn_kernel(%arg0: i32, %arg1: memref<32x16xf32, #tpu.memory_space<vmem>>, %arg2: memref<32x32xf32, #tpu.memory_space<vmem>>, %arg3: memref<16x32xbf16, #tpu.memory_space<vmem>>, %arg4: memref<1x32xf32, #tpu.memory_space<vmem>>, %arg5: memref<32x96xbf16, #tpu.memory_space<vmem>>, %arg6: memref<32x96xbf16, #tpu.memory_space<vmem>>, %arg7: memref<1x64xf32, #tpu.memory_space<vmem>>, %arg8: memref<1x32xf32, #tpu.memory_space<vmem>>, %arg9: memref<1x32xf32, #tpu.memory_space<vmem>>, %arg10: memref<32x64xbf16, #tpu.memory_space<vmem>>, %arg11: memref<1x64xf32, #tpu.memory_space<vmem>>, %arg12: memref<64x64xbf16, #tpu.memory_space<vmem>>, %arg13: memref<16x32xbf16, #tpu.memory_space<vmem>>, %arg14: memref<1x32xf32, #tpu.memory_space<vmem>>, %arg15: memref<32x8xbf16, #tpu.memory_space<vmem>>, %arg16: memref<32x8xbf16, #tpu.memory_space<vmem>>, %arg17: memref<1x8xf32, #tpu.memory_space<vmem>>, %arg18: memref<32x128xf32, #tpu.memory_space<vmem>>) attributes {dimension_semantics = [#tpu.dimension_semantics<parallel>], iteration_bounds = array<i64: 2>, scalar_prefetch = 0 : i64, scratch_operands = 0 : i64, tpu.core_type = #tpu.core_type<tc>, window_params = [{transform_indices = @transform_0, window_bounds = array<i64: 32, 16>}, {transform_indices = @transform_1, window_bounds = array<i64: 32, 32>}, {pipeline_mode = #tpu.pipeline_mode<synchronous>, transform_indices = @transform_2, window_bounds = array<i64: 16, 32>}, {pipeline_mode = #tpu.pipeline_mode<synchronous>, transform_indices = @transform_3, window_bounds = array<i64: 1, 32>}, {pipeline_mode = #tpu.pipeline_mode<synchronous>, transform_indices = @transform_4, window_bounds = array<i64: 32, 96>}, {pipeline_mode = #tpu.pipeline_mode<synchronous>, transform_indices = @transform_5, window_bounds = array<i64: 32, 96>}, {pipeline_mode = #tpu.pipeline_mode<synchronous>, transform_indices = @transform_6, window_bounds = array<i64: 1, 64>}, {pipeline_mode = #tpu.pipeline_mode<synchronous>, transform_indices = @transform_7, window_bounds = array<i64: 1, 32>}, {pipeline_mode = #tpu.pipeline_mode<synchronous>, transform_indices = @transform_8, window_bounds = array<i64: 1, 32>}, {pipeline_mode = #tpu.pipeline_mode<synchronous>, transform_indices = @transform_9, window_bounds = array<i64: 32, 64>}, {pipeline_mode = #tpu.pipeline_mode<synchronous>, transform_indices = @transform_10, window_bounds = array<i64: 1, 64>}, {pipeline_mode = #tpu.pipeline_mode<synchronous>, transform_indices = @transform_11, window_bounds = array<i64: 64, 64>}, {pipeline_mode = #tpu.pipeline_mode<synchronous>, transform_indices = @transform_12, window_bounds = array<i64: 16, 32>}, {pipeline_mode = #tpu.pipeline_mode<synchronous>, transform_indices = @transform_13, window_bounds = array<i64: 1, 32>}, {pipeline_mode = #tpu.pipeline_mode<synchronous>, transform_indices = @transform_14, window_bounds = array<i64: 32, 8>}, {pipeline_mode = #tpu.pipeline_mode<synchronous>, transform_indices = @transform_15, window_bounds = array<i64: 32, 8>}, {pipeline_mode = #tpu.pipeline_mode<synchronous>, transform_indices = @transform_16, window_bounds = array<i64: 1, 8>}, {transform_indices = @transform_17, window_bounds = array<i64: 32, 128>}]} {
    %c0 = arith.constant 0 : index
    %c0_0 = arith.constant 0 : index
    %0 = vector.load %arg1[%c0, %c0_0] : memref<32x16xf32, #tpu.memory_space<vmem>>, vector<32x16xf32>
    %c0_1 = arith.constant 0 : index
    %c0_2 = arith.constant 0 : index
    %1 = vector.load %arg2[%c0_1, %c0_2] : memref<32x32xf32, #tpu.memory_space<vmem>>, vector<32x32xf32>
    %2 = arith.truncf %0 : vector<32x16xf32> to vector<32x16xbf16>
    %cst = arith.constant dense<0.000000e+00> : vector<32xf32>
    %3 = vector.multi_reduction <add>, %0, %cst [1] : vector<32x16xf32> to vector<32xf32>
    %4 = vector.shape_cast %3 : vector<32xf32> to vector<32x1xf32>
    %cst_3 = arith.constant 0.000000e+00 : f32
    %5 = vector.broadcast %cst_3 : f32 to vector<32x1xf32>
    %6 = arith.cmpf ogt, %4, %5 : vector<32x1xf32>
    %7 = arith.extui %6 : vector<32x1xi1> to vector<32x1xi32>
    %8 = arith.sitofp %7 : vector<32x1xi32> to vector<32x1xf32>
    %9 = tpu.transpose %8, [1, 0] : vector<32x1xf32> -> vector<1x32xf32>
    %10 = tpu.iota {dimensions = array<i32: 0>} : vector<32x1xi32>
    %11 = arith.sitofp %10 : vector<32x1xi32> to vector<32x1xf32>
    %12 = tpu.iota {dimensions = array<i32: 1>} : vector<1x32xi32>
    %13 = arith.sitofp %12 : vector<1x32xi32> to vector<1x32xf32>
    %cst_4 = arith.constant 5.000000e-01 : f32
    %14 = vector.broadcast %cst_4 : f32 to vector<32x1xf32>
    %15 = arith.addf %11, %14 : vector<32x1xf32>
    %cst_5 = arith.constant 2.500000e-01 : f32
    %16 = vector.broadcast %cst_5 : f32 to vector<32x1xf32>
    %17 = arith.mulf %15, %16 : vector<32x1xf32>
    %18 = math.floor %17 : vector<32x1xf32>
    %cst_6 = arith.constant 5.000000e-01 : f32
    %19 = vector.broadcast %cst_6 : f32 to vector<1x32xf32>
    %20 = arith.addf %13, %19 : vector<1x32xf32>
    %cst_7 = arith.constant 2.500000e-01 : f32
    %21 = vector.broadcast %cst_7 : f32 to vector<1x32xf32>
    %22 = arith.mulf %20, %21 : vector<1x32xf32>
    %23 = math.floor %22 : vector<1x32xf32>
    %24 = vector.broadcast %18 : vector<32x1xf32> to vector<32x32xf32>
    %25 = vector.broadcast %23 : vector<1x32xf32> to vector<32x32xf32>
    %26 = arith.cmpf oeq, %24, %25 : vector<32x32xf32>
    %cst_8 = arith.constant 5.000000e-01 : f32
    %27 = vector.broadcast %cst_8 : f32 to vector<32x1xf32>
    %28 = arith.cmpf ogt, %8, %27 : vector<32x1xf32>
    %29 = vector.broadcast %28 : vector<32x1xi1> to vector<32x32xi1>
    %30 = arith.andi %26, %29 : vector<32x32xi1>
    %cst_9 = arith.constant 5.000000e-01 : f32
    %31 = vector.broadcast %cst_9 : f32 to vector<1x32xf32>
    %32 = arith.cmpf ogt, %9, %31 : vector<1x32xf32>
    %33 = vector.broadcast %32 : vector<1x32xi1> to vector<32x32xi1>
    %34 = arith.andi %30, %33 : vector<32x32xi1>
    %c0_10 = arith.constant 0 : index
    %c0_11 = arith.constant 0 : index
    %35 = vector.load %arg3[%c0_10, %c0_11] : memref<16x32xbf16, #tpu.memory_space<vmem>>, vector<16x32xbf16>
    %cst_12 = arith.constant dense<0.000000e+00> : vector<32x32xf32>
    %36 = tpu.matmul %2, %35, %cst_12 {dimension_numbers = #tpu.dot_dimension_numbers<[1], [0], [0], [1], [0, 0, 1, 1], [], []>} : vector<32x16xbf16>, vector<16x32xbf16>, vector<32x32xf32> -> vector<32x32xf32>
    %c0_13 = arith.constant 0 : index
    %c0_14 = arith.constant 0 : index
    %37 = vector.load %arg4[%c0_13, %c0_14] : memref<1x32xf32, #tpu.memory_space<vmem>>, vector<1x32xf32>
    %38 = vector.broadcast %37 : vector<1x32xf32> to vector<32x32xf32>
    %39 = arith.addf %36, %38 : vector<32x32xf32>
    %cst_15 = arith.constant 0.000000e+00 : f32
    %40 = vector.broadcast %cst_15 : f32 to vector<32x32xf32>
    %41 = arith.maximumf %39, %40 : vector<32x32xf32>
    %42 = arith.truncf %1 : vector<32x32xf32> to vector<32x32xbf16>
    %43 = arith.truncf %41 : vector<32x32xf32> to vector<32x32xbf16>
    %c0_16 = arith.constant 0 : index
    %c0_17 = arith.constant 0 : index
    %44 = vector.load %arg5[%c0_16, %c0_17] : memref<32x96xbf16, #tpu.memory_space<vmem>>, vector<32x96xbf16>
    %cst_18 = arith.constant dense<0.000000e+00> : vector<32x96xf32>
    %45 = tpu.matmul %43, %44, %cst_18 {dimension_numbers = #tpu.dot_dimension_numbers<[1], [0], [0], [1], [0, 0, 1, 1], [], []>} : vector<32x32xbf16>, vector<32x96xbf16>, vector<32x96xf32> -> vector<32x96xf32>
    %c0_19 = arith.constant 0 : index
    %c0_20 = arith.constant 0 : index
    %46 = vector.load %arg6[%c0_19, %c0_20] : memref<32x96xbf16, #tpu.memory_space<vmem>>, vector<32x96xbf16>
    %cst_21 = arith.constant dense<0.000000e+00> : vector<32x96xf32>
    %47 = tpu.matmul %42, %46, %cst_21 {dimension_numbers = #tpu.dot_dimension_numbers<[1], [0], [0], [1], [0, 0, 1, 1], [], []>} : vector<32x32xbf16>, vector<32x96xbf16>, vector<32x96xf32> -> vector<32x96xf32>
    %48 = vector.extract_strided_slice %45 {offsets = [0, 0], sizes = [32, 64], strides = [1, 1]} : vector<32x96xf32> to vector<32x64xf32>
    %49 = vector.extract_strided_slice %47 {offsets = [0, 0], sizes = [32, 64], strides = [1, 1]} : vector<32x96xf32> to vector<32x64xf32>
    %50 = arith.addf %48, %49 : vector<32x64xf32>
    %c0_22 = arith.constant 0 : index
    %c0_23 = arith.constant 0 : index
    %51 = vector.load %arg7[%c0_22, %c0_23] : memref<1x64xf32, #tpu.memory_space<vmem>>, vector<1x64xf32>
    %52 = vector.broadcast %51 : vector<1x64xf32> to vector<32x64xf32>
    %53 = arith.addf %50, %52 : vector<32x64xf32>
    %54 = arith.negf %53 : vector<32x64xf32>
    %55 = math.exp %54 : vector<32x64xf32>
    %cst_24 = arith.constant 1.000000e+00 : f32
    %56 = vector.broadcast %cst_24 : f32 to vector<32x64xf32>
    %57 = arith.addf %56, %55 : vector<32x64xf32>
    %58 = arith.divf %56, %57 : vector<32x64xf32>
    %59 = vector.extract_strided_slice %58 {offsets = [0, 0], sizes = [32, 32], strides = [1, 1]} : vector<32x64xf32> to vector<32x32xf32>
    %60 = vector.extract_strided_slice %58 {offsets = [0, 32], sizes = [32, 32], strides = [1, 1]} : vector<32x64xf32> to vector<32x32xf32>
    %61 = vector.extract_strided_slice %45 {offsets = [0, 64], sizes = [32, 32], strides = [1, 1]} : vector<32x96xf32> to vector<32x32xf32>
    %c0_25 = arith.constant 0 : index
    %c0_26 = arith.constant 0 : index
    %62 = vector.load %arg8[%c0_25, %c0_26] : memref<1x32xf32, #tpu.memory_space<vmem>>, vector<1x32xf32>
    %63 = vector.broadcast %62 : vector<1x32xf32> to vector<32x32xf32>
    %64 = arith.addf %61, %63 : vector<32x32xf32>
    %65 = vector.extract_strided_slice %47 {offsets = [0, 64], sizes = [32, 32], strides = [1, 1]} : vector<32x96xf32> to vector<32x32xf32>
    %c0_27 = arith.constant 0 : index
    %c0_28 = arith.constant 0 : index
    %66 = vector.load %arg9[%c0_27, %c0_28] : memref<1x32xf32, #tpu.memory_space<vmem>>, vector<1x32xf32>
    %67 = vector.broadcast %66 : vector<1x32xf32> to vector<32x32xf32>
    %68 = arith.addf %65, %67 : vector<32x32xf32>
    %69 = arith.mulf %59, %68 : vector<32x32xf32>
    %70 = arith.addf %64, %69 : vector<32x32xf32>
    %71 = math.tanh %70 : vector<32x32xf32>
    %cst_29 = arith.constant 1.000000e+00 : f32
    %72 = vector.broadcast %cst_29 : f32 to vector<32x32xf32>
    %73 = arith.subf %72, %60 : vector<32x32xf32>
    %74 = arith.mulf %73, %71 : vector<32x32xf32>
    %75 = arith.mulf %60, %1 : vector<32x32xf32>
    %76 = arith.addf %74, %75 : vector<32x32xf32>
    %77 = arith.truncf %76 : vector<32x32xf32> to vector<32x32xbf16>
    %c0_30 = arith.constant 0 : index
    %c0_31 = arith.constant 0 : index
    %78 = vector.load %arg10[%c0_30, %c0_31] : memref<32x64xbf16, #tpu.memory_space<vmem>>, vector<32x64xbf16>
    %cst_32 = arith.constant dense<0.000000e+00> : vector<32x64xf32>
    %79 = tpu.matmul %77, %78, %cst_32 {dimension_numbers = #tpu.dot_dimension_numbers<[1], [0], [0], [1], [0, 0, 1, 1], [], []>} : vector<32x32xbf16>, vector<32x64xbf16>, vector<32x64xf32> -> vector<32x64xf32>
    %c0_33 = arith.constant 0 : index
    %c0_34 = arith.constant 0 : index
    %80 = vector.load %arg11[%c0_33, %c0_34] : memref<1x64xf32, #tpu.memory_space<vmem>>, vector<1x64xf32>
    %81 = vector.broadcast %80 : vector<1x64xf32> to vector<32x64xf32>
    %82 = arith.addf %79, %81 : vector<32x64xf32>
    %cst_35 = arith.constant 0.000000e+00 : f32
    %83 = vector.broadcast %cst_35 : f32 to vector<32x64xf32>
    %84 = arith.maximumf %82, %83 : vector<32x64xf32>
    %85 = arith.truncf %84 : vector<32x64xf32> to vector<32x64xbf16>
    %c0_36 = arith.constant 0 : index
    %c0_37 = arith.constant 0 : index
    %86 = vector.load %arg12[%c0_36, %c0_37] : memref<64x64xbf16, #tpu.memory_space<vmem>>, vector<64x64xbf16>
    %cst_38 = arith.constant dense<0.000000e+00> : vector<32x64xf32>
    %87 = tpu.matmul %85, %86, %cst_38 {dimension_numbers = #tpu.dot_dimension_numbers<[1], [0], [0], [1], [0, 0, 1, 1], [], []>} : vector<32x64xbf16>, vector<64x64xbf16>, vector<32x64xf32> -> vector<32x64xf32>
    %88 = arith.truncf %87 : vector<32x64xf32> to vector<32x64xbf16>
    %cst_39 = arith.constant dense<0.000000e+00> : vector<32x32xf32>
    %89 = tpu.matmul %88, %85, %cst_39 {dimension_numbers = #tpu.dot_dimension_numbers<[1], [1], [0], [0], [0, 0, 1, 0], [], []>} : vector<32x64xbf16>, vector<32x64xbf16>, vector<32x32xf32> -> vector<32x32xf32>
    %cst_40 = arith.constant 1.250000e-01 : f32
    %90 = vector.broadcast %cst_40 : f32 to vector<32x32xf32>
    %91 = arith.mulf %89, %90 : vector<32x32xf32>
    %cst_41 = arith.constant -1.000000e+10 : f32
    %92 = vector.broadcast %cst_41 : f32 to vector<32x32xf32>
    %93 = arith.select %34, %91, %92 : vector<32x32xi1>, vector<32x32xf32>
    %cst_42 = arith.constant dense<0xFF800000> : vector<32xf32>
    %94 = vector.multi_reduction <maximumf>, %93, %cst_42 [1] : vector<32x32xf32> to vector<32xf32>
    %95 = vector.shape_cast %94 : vector<32xf32> to vector<32x1xf32>
    %96 = vector.broadcast %95 : vector<32x1xf32> to vector<32x32xf32>
    %97 = arith.subf %93, %96 : vector<32x32xf32>
    %98 = math.exp %97 : vector<32x32xf32>
    %cst_43 = arith.constant dense<0.000000e+00> : vector<32xf32>
    %99 = vector.multi_reduction <add>, %98, %cst_43 [1] : vector<32x32xf32> to vector<32xf32>
    %100 = vector.shape_cast %99 : vector<32xf32> to vector<32x1xf32>
    %101 = tpu.reciprocal %100 {approx = true} : vector<32x1xf32> -> vector<32x1xf32>
    %102 = vector.broadcast %101 : vector<32x1xf32> to vector<32x32xf32>
    %103 = arith.mulf %98, %102 : vector<32x32xf32>
    %cst_44 = arith.constant 0.000000e+00 : f32
    %104 = vector.broadcast %cst_44 : f32 to vector<32x32xf32>
    %105 = arith.select %34, %103, %104 : vector<32x32xi1>, vector<32x32xf32>
    %106 = arith.truncf %105 : vector<32x32xf32> to vector<32x32xbf16>
    %cst_45 = arith.constant dense<0.000000e+00> : vector<32x16xf32>
    %107 = tpu.matmul %106, %2, %cst_45 {dimension_numbers = #tpu.dot_dimension_numbers<[1], [0], [0], [1], [0, 0, 1, 1], [], []>} : vector<32x32xbf16>, vector<32x16xbf16>, vector<32x16xf32> -> vector<32x16xf32>
    %108 = arith.truncf %107 : vector<32x16xf32> to vector<32x16xbf16>
    %c0_46 = arith.constant 0 : index
    %c0_47 = arith.constant 0 : index
    %109 = vector.load %arg13[%c0_46, %c0_47] : memref<16x32xbf16, #tpu.memory_space<vmem>>, vector<16x32xbf16>
    %cst_48 = arith.constant dense<0.000000e+00> : vector<32x32xf32>
    %110 = tpu.matmul %108, %109, %cst_48 {dimension_numbers = #tpu.dot_dimension_numbers<[1], [0], [0], [1], [0, 0, 1, 1], [], []>} : vector<32x16xbf16>, vector<16x32xbf16>, vector<32x32xf32> -> vector<32x32xf32>
    %c0_49 = arith.constant 0 : index
    %c0_50 = arith.constant 0 : index
    %111 = vector.load %arg14[%c0_49, %c0_50] : memref<1x32xf32, #tpu.memory_space<vmem>>, vector<1x32xf32>
    %112 = vector.broadcast %111 : vector<1x32xf32> to vector<32x32xf32>
    %113 = arith.addf %110, %112 : vector<32x32xf32>
    %cst_51 = arith.constant 0.000000e+00 : f32
    %114 = vector.broadcast %cst_51 : f32 to vector<32x32xf32>
    %115 = arith.maximumf %113, %114 : vector<32x32xf32>
    %116 = arith.truncf %115 : vector<32x32xf32> to vector<32x32xbf16>
    %c0_52 = arith.constant 0 : index
    %c0_53 = arith.constant 0 : index
    %117 = vector.load %arg15[%c0_52, %c0_53] : memref<32x8xbf16, #tpu.memory_space<vmem>>, vector<32x8xbf16>
    %cst_54 = arith.constant dense<0.000000e+00> : vector<32x8xf32>
    %118 = tpu.matmul %116, %117, %cst_54 {dimension_numbers = #tpu.dot_dimension_numbers<[1], [0], [0], [1], [0, 0, 1, 1], [], []>} : vector<32x32xbf16>, vector<32x8xbf16>, vector<32x8xf32> -> vector<32x8xf32>
    %c0_55 = arith.constant 0 : index
    %c0_56 = arith.constant 0 : index
    %119 = vector.load %arg16[%c0_55, %c0_56] : memref<32x8xbf16, #tpu.memory_space<vmem>>, vector<32x8xbf16>
    %cst_57 = arith.constant dense<0.000000e+00> : vector<32x8xf32>
    %120 = tpu.matmul %77, %119, %cst_57 {dimension_numbers = #tpu.dot_dimension_numbers<[1], [0], [0], [1], [0, 0, 1, 1], [], []>} : vector<32x32xbf16>, vector<32x8xbf16>, vector<32x8xf32> -> vector<32x8xf32>
    %121 = arith.addf %118, %120 : vector<32x8xf32>
    %c0_58 = arith.constant 0 : index
    %c0_59 = arith.constant 0 : index
    %122 = vector.load %arg17[%c0_58, %c0_59] : memref<1x8xf32, #tpu.memory_space<vmem>>, vector<1x8xf32>
    %123 = vector.broadcast %122 : vector<1x8xf32> to vector<32x8xf32>
    %124 = arith.addf %121, %123 : vector<32x8xf32>
    %c0_60 = arith.constant 0 : index
    %c0_61 = arith.constant 0 : index
    %125 = vector.load %arg18[%c0_60, %c0_61] : memref<32x128xf32, #tpu.memory_space<vmem>>, vector<32x8xf32>
    tpu.vector_store %arg18[%c0_60, %c0_61], %124 {strides = array<i32>} : memref<32x128xf32, #tpu.memory_space<vmem>>, vector<32x8xf32>,
    %c0_62 = arith.constant 0 : index
    %c8 = arith.constant 8 : index
    %126 = vector.load %arg18[%c0_62, %c8] : memref<32x128xf32, #tpu.memory_space<vmem>>, vector<32x32xf32>
    tpu.vector_store %arg18[%c0_62, %c8], %76 {strides = array<i32>} : memref<32x128xf32, #tpu.memory_space<vmem>>, vector<32x32xf32>,
    %c0_63 = arith.constant 0 : index
    %c40 = arith.constant 40 : index
    %127 = vector.load %arg18[%c0_63, %c40] : memref<32x128xf32, #tpu.memory_space<vmem>>, vector<32x32xf32>
    tpu.vector_store %arg18[%c0_63, %c40], %115 {strides = array<i32>} : memref<32x128xf32, #tpu.memory_space<vmem>>, vector<32x32xf32>,
    %cst_64 = arith.constant 0.000000e+00 : f32
    %128 = vector.broadcast %cst_64 : f32 to vector<32x56xf32>
    %c0_65 = arith.constant 0 : index
    %c72 = arith.constant 72 : index
    %129 = vector.load %arg18[%c0_65, %c72] : memref<32x128xf32, #tpu.memory_space<vmem>>, vector<32x56xf32>
    tpu.vector_store %arg18[%c0_65, %c72], %128 {strides = array<i32>} : memref<32x128xf32, #tpu.memory_space<vmem>>, vector<32x56xf32>,
    return
  }
  func.func @transform_0(%arg0: i32) -> (i32, i32) {
    %c0_i32 = arith.constant 0 : i32
    %c0_i32_0 = arith.constant 0 : i32
    return %arg0, %c0_i32 : i32, i32
  }
  func.func @transform_1(%arg0: i32) -> (i32, i32) {
    %c0_i32 = arith.constant 0 : i32
    %c0_i32_0 = arith.constant 0 : i32
    return %arg0, %c0_i32 : i32, i32
  }
  func.func @transform_2(%arg0: i32) -> (i32, i32) {
    %c0_i32 = arith.constant 0 : i32
    %c0_i32_0 = arith.constant 0 : i32
    %c0_i32_1 = arith.constant 0 : i32
    return %c0_i32, %c0_i32_0 : i32, i32
  }
  func.func @transform_3(%arg0: i32) -> (i32, i32) {
    %c0_i32 = arith.constant 0 : i32
    %c0_i32_0 = arith.constant 0 : i32
    %c0_i32_1 = arith.constant 0 : i32
    return %c0_i32, %c0_i32_0 : i32, i32
  }
  func.func @transform_4(%arg0: i32) -> (i32, i32) {
    %c0_i32 = arith.constant 0 : i32
    %c0_i32_0 = arith.constant 0 : i32
    %c0_i32_1 = arith.constant 0 : i32
    return %c0_i32, %c0_i32_0 : i32, i32
  }
  func.func @transform_5(%arg0: i32) -> (i32, i32) {
    %c0_i32 = arith.constant 0 : i32
    %c0_i32_0 = arith.constant 0 : i32
    %c0_i32_1 = arith.constant 0 : i32
    return %c0_i32, %c0_i32_0 : i32, i32
  }
  func.func @transform_6(%arg0: i32) -> (i32, i32) {
    %c0_i32 = arith.constant 0 : i32
    %c0_i32_0 = arith.constant 0 : i32
    %c0_i32_1 = arith.constant 0 : i32
    return %c0_i32, %c0_i32_0 : i32, i32
  }
  func.func @transform_7(%arg0: i32) -> (i32, i32) {
    %c0_i32 = arith.constant 0 : i32
    %c0_i32_0 = arith.constant 0 : i32
    %c0_i32_1 = arith.constant 0 : i32
    return %c0_i32, %c0_i32_0 : i32, i32
  }
  func.func @transform_8(%arg0: i32) -> (i32, i32) {
    %c0_i32 = arith.constant 0 : i32
    %c0_i32_0 = arith.constant 0 : i32
    %c0_i32_1 = arith.constant 0 : i32
    return %c0_i32, %c0_i32_0 : i32, i32
  }
  func.func @transform_9(%arg0: i32) -> (i32, i32) {
    %c0_i32 = arith.constant 0 : i32
    %c0_i32_0 = arith.constant 0 : i32
    %c0_i32_1 = arith.constant 0 : i32
    return %c0_i32, %c0_i32_0 : i32, i32
  }
  func.func @transform_10(%arg0: i32) -> (i32, i32) {
    %c0_i32 = arith.constant 0 : i32
    %c0_i32_0 = arith.constant 0 : i32
    %c0_i32_1 = arith.constant 0 : i32
    return %c0_i32, %c0_i32_0 : i32, i32
  }
  func.func @transform_11(%arg0: i32) -> (i32, i32) {
    %c0_i32 = arith.constant 0 : i32
    %c0_i32_0 = arith.constant 0 : i32
    %c0_i32_1 = arith.constant 0 : i32
    return %c0_i32, %c0_i32_0 : i32, i32
  }
  func.func @transform_12(%arg0: i32) -> (i32, i32) {
    %c0_i32 = arith.constant 0 : i32
    %c0_i32_0 = arith.constant 0 : i32
    %c0_i32_1 = arith.constant 0 : i32
    return %c0_i32, %c0_i32_0 : i32, i32
  }
  func.func @transform_13(%arg0: i32) -> (i32, i32) {
    %c0_i32 = arith.constant 0 : i32
    %c0_i32_0 = arith.constant 0 : i32
    %c0_i32_1 = arith.constant 0 : i32
    return %c0_i32, %c0_i32_0 : i32, i32
  }
  func.func @transform_14(%arg0: i32) -> (i32, i32) {
    %c0_i32 = arith.constant 0 : i32
    %c0_i32_0 = arith.constant 0 : i32
    %c0_i32_1 = arith.constant 0 : i32
    return %c0_i32, %c0_i32_0 : i32, i32
  }
  func.func @transform_15(%arg0: i32) -> (i32, i32) {
    %c0_i32 = arith.constant 0 : i32
    %c0_i32_0 = arith.constant 0 : i32
    %c0_i32_1 = arith.constant 0 : i32
    return %c0_i32, %c0_i32_0 : i32, i32
  }
  func.func @transform_16(%arg0: i32) -> (i32, i32) {
    %c0_i32 = arith.constant 0 : i32
    %c0_i32_0 = arith.constant 0 : i32
    %c0_i32_1 = arith.constant 0 : i32
    return %c0_i32, %c0_i32_0 : i32, i32
  }
  func.func @transform_17(%arg0: i32) -> (i32, i32) {
    %c0_i32 = arith.constant 0 : i32
    %c0_i32_0 = arith.constant 0 : i32
    return %arg0, %c0_i32 : i32, i32
  }
}

</mosaic_0001>

<bundles_post_ra>
// kernel: xrnn_agent_forward.1
= control target key start
LH: loop header
LB: loop body
LE: loop exit
PB: predicated region body
PF: predicated region fallthrough
CT: control target
= control target key end

     0   :  { %s2135_s24 = smov 0   ;;  %s2443_s0 = inlined_call_operand.vmem [shape: f32[64,16], index: 0, kind: input, shape index: {}]   ;;  %s2444_s1 = inlined_call_operand.vmem [shape: f32[64,32], index: 1, kind: input, shape index: {}]   ;;  %s2445_s2 = inlined_call_operand.vmem [shape: bf16[16,32], index: 2, kind: input, shape index: {}]   ;;  %s2446_s3 = inlined_call_operand.vmem [shape: f32[1,32], index: 3, kind: input, shape index: {}]   ;;  %s2447_s4 = inlined_call_operand.vmem [shape: bf16[32,96], index: 4, kind: input, shape index: {}]   ;;  %s2448_s5 = inlined_call_operand.vmem [shape: bf16[32,96], index: 5, kind: input, shape index: {}]   ;;  %s2449_s6 = inlined_call_operand.vmem [shape: f32[1,64], index: 6, kind: input, shape index: {}]   ;;  %s2450_s7 = inlined_call_operand.vmem [shape: f32[1,32], index: 7, kind: input, shape index: {}]   ;;  %s2451_s8 = inlined_call_operand.vmem [shape: f32[1,32], index: 8, kind: input, shape index: {}]   ;;  %s2452_s9 = inlined_call_operand.vmem [shape: bf16[32,64], index: 9, kind: input, shape index: {}]   ;;  %s2453_s10 = inlined_call_operand.vmem [shape: f32[1,64], index: 10, kind: input, shape index: {}]   ;;  %s2454_s11 = inlined_call_operand.vmem [shape: bf16[64,64], index: 11, kind: input, shape index: {}]   ;;  %s2455_s12 = inlined_call_operand.vmem [shape: bf16[16,32], index: 12, kind: input, shape index: {}]   ;;  %s2456_s13 = inlined_call_operand.vmem [shape: f32[1,32], index: 13, kind: input, shape index: {}]   ;;  %s2457_s14 = inlined_call_operand.vmem [shape: bf16[32,8], index: 14, kind: input, shape index: {}]   ;;  %s2458_s15 = inlined_call_operand.vmem [shape: bf16[32,8], index: 15, kind: input, shape index: {}]   ;;  %s2459_s16 = inlined_call_operand.vmem [shape: f32[1,8], index: 16, kind: input, shape index: {}]   ;;  %s2460_s17 = inlined_call_operand.vmem [shape: f32[64,128], index: 17, kind: output, shape index: {}]  }
   0x1   :  { %2461 = sst [smem:[#allocation2_spill]] %s2443_s0 }
   0x2   :  { %2462 = sst [smem:[#allocation3_spill]] %s2444_s1 }
   0x3 LB: > { %s1773_s25 = sadd.s32 4294967295, %s2036_s24   ;;  %p1777_p0 = scmp.ge.s32.totalorder %s2036_s24, 1  ;;  %s2036_s24 = sphi %s2135_s24, %s27_s24  }
   0x4   : > { %p499_p1 = scmp.lt.s32.totalorder %s2036_s24, 3 }
   0x6   : > { %p500_p2 = pnand %p1777_p0, %p499_p1 }
   0x7   : > { %s1778_s28 = sshll.u32 (!%p500_p2), %s1773_s25, 2  ;;  %s2038_s1 = smov (!%p500_p2), 64  }
   0x8   : > { %503 = sbr.rel (%p500_p2) target bundleno = 2390 (0x956), region = 88  ;;  %p557_p3 = scmp.lt.s32.totalorder (!%p500_p2), %s1778_s28, 7 }
   0x9   : > { %s2463_s22 = sld [smem:[#allocation2_spill]] (!%p500_p2)  ;;  %s2039_s29 = smov (!%p500_p2), 32  }
   0xa   : > { %s2464_s27 = sld [smem:[#allocation3_spill]] (!%p500_p2)  ;;  %s2044_s30 = smov (!%p500_p2), 40  }
   0xd   : > { %v1974_v0 = vld [vmem:[%s2445_s2] sm:$0xff]   ;;  %v1975_v1 = vld [vmem:[%s2448_s5 + $0x8] sm:$0xff]   ;;  %s2474_s28 = smov (!%p557_p3, %s1778_s28), 7  ;;  %vm585_vm0 = vcmask 130048   ;;  %vm794_vm1 = vcmask 261120   ;;  %vm1202_vm6 = vcmask 523264  }
   0xe   : > { %1877 = vmatprep.subr.bf16.mxu0 %v1974_v0  ;;  %v1806_v2 = vld [vmem:[%s2451_s8] ss:$0 sm:$0xff]  ;;  %s2152_s19 = sshll.u32 %s2474_s28, 3  ;;  %v1977_v16 = vld [vmem:[%s2447_s4 + $0x8] sm:$0xff]  }
   0xf   : > { %1878 = vmatpush3.bf16.msra.mxu0 %v1974_v0  ;;  %979 = vrot.lane.b32.xlu0 %v1806_v2, %s2038_s1  ;;  %s560_s23 = scalar_lea.vmem %s2463_s22, %s2152_s19  ;;  %v1976_v11 = vld [vmem:[%s2448_s5] sm:$0xff]   ;;  %s2411_s21 = scalar_lea.vmem %s2460_s17, %s2152_s19 }
  0x10   : > { %1891 = vmatprep.subr.bf16.mxu0 %v1975_v1  ;;  %v2159_v3 = vld [vmem:[%s560_s23] sm:$0xff]  ;;  %v2161_v4 = vld [vmem:[%s560_s23 + $0x8] sm:$0xff]  ;;  %v2163_v5 = vld [vmem:[%s560_s23 + $0x10] sm:$0xff]  ;;  %s566_s28 = scalar_lea.vmem %s2464_s27, %s2152_s19  ;;  %1883 = vmatprep.subr.bf16.mxu1 %v1977_v16 }
  0x11   : > { %v2171_v6 = vpack.c.bf16 %v2161_v4, %v2159_v3  ;;  %v2173_v7 = vld [vmem:[%s560_s23 + $0x18] sm:$0xff]  ;;  %v2175_v8 = vld [vmem:[%s566_s28] sm:$0xff]  ;;  %v2177_v9 = vld [vmem:[%s566_s28 + $0x8] sm:$0xff]  ;;  %1884 = vmatpush3.bf16.msra.mxu1 %v1977_v16 }
  0x12   : > { %v2181_v10 = vpack.c.bf16 %v2173_v7, %v2163_v5  ;;  %v774_v12 = vpack.c.bf16 %v2177_v9, %v2175_v8  ;;  %v2190_v13 = vld [vmem:[%s566_s28 + $0x10] sm:$0xff]  ;;  %v2192_v14 = vld [vmem:[%s566_s28 + $0x18] sm:$0xff]  ;;  %v1978_v17 = vld [vmem:[%s2447_s4] sm:$0xff]  }
  0x13   : > { %1879 = vmatprep.mubr.msk.bf16.mxu0 %vm585_vm0, %v2171_v6  ;;  %v775_v15 = vpack.c.bf16 %v2192_v14, %v2190_v13  ;;  %1885 = vmatprep.subr.bf16.mxu1 %v1978_v17  ;;  %v1788_v20 = vld [vmem:[%s2446_s3] ss:$0 sm:$0xff] }
  0x14   : > { %1880 = vmatmul.mubr.msk.bf16.vlgmr.msra.gmra.mxu0 %vm585_vm0, %v2181_v10  ;;  %v1805_v42 = vld [vmem:[%s2450_s7] ss:$0 sm:$0xff] }
  0x15   : > { %1892 = vmatpush3.bf16.msra.mxu0 %v1975_v1  ;;  %1895 = vmatprep.mubr.msk.bf16.mxu0 %vm794_vm1, %v774_v12  ;;  %v1800_v44 = vld [vmem:[%s2449_s6] ss:$0 sm:$0xff] }
  0x16   : > { %1893 = vmatprep.subr.bf16.mxu0 %v1976_v11  ;;  %1886 = vmatpush3.bf16.msra.mxu1 %v1978_v17 }
  0x19   : > { %1894 = vmatpush3.bf16.msra.mxu0 %v1976_v11 }
  0x1c   : > { %1896 = vmatmul.mubr.msk.bf16.vlgmr.msra.gmra.mxu0 %vm794_vm1, %v775_v15 }
  0x81   : > { %v980_v33 = vpop.permute.xlu0 %979 }
  0xd4   : > { %v1881_v18 = vpop.f32.mrf.mxu0 }
  0xd5   : > { %v764_v24 = vadd.f32 %v1881_v18, %v1788_v20 }
  0xd6   : > { %v755_v19 = vpop.f32.mrf.mxu0 }
  0xd7   : > { %v756_v22 = vadd.f32 %v1788_v20, %v755_v19  ;;  %v772_v31 = vmax.f32 %v764_v24, 0.0 }
  0xd8   : > { %v1882_v21 = vpop.f32.mrf.mxu0 }
  0xd9   : > { %v767_v23 = vadd.f32 %v1882_v21, %v1788_v20  ;;  %v770_v29 = vmax.f32 %v756_v22, 0.0 }
  0xda   : > { %v758_v25 = vpop.f32.mrf.mxu0 }
  0xdb   : > { %v759_v26 = vadd.f32 %v1788_v20, %v758_v25  ;;  %v773_v27 = vmax.f32 %v767_v23, 0.0 }
  0xdc   : > { %v1897_v28 = vpop.f32.mrf.mxu0 }
  0xdd   : > { %v771_v30 = vmax.f32 %v759_v26, 0.0  ;;  %v777_v36 = vpack.c.bf16 %v773_v27, %v772_v31  ;;  %v984_v41 = vadd.f32 %v1897_v28, %v980_v33 }
  0xde   : > { %v906_v32 = vpop.f32.mrf.mxu0 }
  0xdf   : > { %v776_v34 = vpack.c.bf16 %v771_v30, %v770_v29  ;;  %v982_v35 = vadd.f32 %v980_v33, %v906_v32 }
  0xe0   : > { %v1898_v37 = vpop.f32.mrf.mxu0 }
  0xe1   : > { %1887 = vmatprep.mubr.msk.bf16.mxu1 %vm794_vm1, %v776_v34  ;;  %990 = vrot.lane.b32.xlu0 %v982_v35, %s2038_s1  ;;  %v985_v38 = vadd.f32 %v1898_v37, %v980_v33 }
  0xe2   : > { %1888 = vmatmul.mubr.msk.bf16.vlgmr.msra.gmra.mxu1 %vm794_vm1, %v777_v36  ;;  %v909_v39 = vpop.f32.mrf.mxu0 }
  0xe3   : > { %v983_v40 = vadd.f32 %v980_v33, %v909_v39 }
  0xe5   : > { %992 = vrot.lane.b32.xlu1 %v983_v40, %s2038_s1  ;;  %996 = vrot.lane.b32.xlu0 %v985_v38, %s2038_s1 }
  0xe9   : > { %994 = vrot.lane.b32.xlu1 %v984_v41, %s2038_s1  ;;  %v1979_v41 = vld [vmem:[%s2452_s9 + $0x8] sm:$0xff]  }
  0xea   : > { %1899 = vmatprep.subr.bf16.mxu1 %v1979_v41 }
  0xeb   : > { %1900 = vmatpush3.bf16.msra.mxu1 %v1979_v41 }
  0xed   : > { %966 = vrot.lane.b32.xlu1 %v1805_v42, %s2038_s1  ;;  %v1980_v42 = vld [vmem:[%s2452_s9] sm:$0xff]  }
  0xee   : > { %1901 = vmatprep.subr.bf16.mxu1 %v1980_v42 }
  0xef   : > { %1902 = vmatpush3.bf16.msra.mxu1 %v1980_v42 }
 0x153   : > { %v991_v16 = vpop.permute.xlu0 %990 }
 0x157   : > { %v993_v12 = vpop.permute.xlu1 %992  ;;  %v997_v24 = vpop.permute.xlu0 %996 }
 0x15b   : > { %v995_v20 = vpop.permute.xlu1 %994 }
 0x15f   : > { %v967_v26 = vpop.permute.xlu1 %966 }
 0x1a2   : > { %v1889_v43 = vpop.f32.mrf.mxu1 }
 0x1a3   : > { %v923_v45 = vadd.f32 %v1897_v28, %v1889_v43  ;;  %v971_v28 = vadd.f32 %v1889_v43, %v967_v26 }
 0x1a4   : > { %v835_v46 = vpop.f32.mrf.mxu1 }
 0x1a5   : > { %v934_v47 = vadd.f32 %v1800_v44, %v923_v45  ;;  %v921_v48 = vadd.f32 %v906_v32, %v835_v46  ;;  %v969_v29 = vadd.f32 %v967_v26, %v835_v46 }
 0x1a6   : > { %v1890_v49 = vpop.f32.mrf.mxu1 }
 0x1a7   : > { %v1803_v50 = vmul.f32 -1.442695, %v934_v47  ;;  %v932_v51 = vadd.f32 %v1800_v44, %v921_v48  ;;  %v924_v52 = vadd.f32 %v1898_v37, %v1890_v49  ;;  %v972_v34 = vadd.f32 %v1890_v49, %v967_v26 }
 0x1a8   : > { %v838_v53 = vpop.f32.mrf.mxu1 }
 0x1a9   : > { %1990 = vpow2.f32 %v1803_v50  ;;  %v1801_v54 = vmul.f32 -1.442695, %v932_v51  ;;  %v935_v55 = vadd.f32 %v1800_v44, %v924_v52  ;;  %v922_v56 = vadd.f32 %v909_v39, %v838_v53 }
 0x1aa   : > { %v970_v36 = vadd.f32 %v967_v26, %v838_v53  ;;  %v1983_v26 = vld [vmem:[%s2454_s11 + $0x8] sm:$0xff]  }
 0x1ab   : > { %1992 = vpow2.f32 %v1801_v54  ;;  %v1804_v57 = vmul.f32 -1.442695, %v935_v55  ;;  %v933_v58 = vadd.f32 %v1800_v44, %v922_v56 }
 0x1ad   : > { %1994 = vpow2.f32 %v1804_v57  ;;  %v1802_v59 = vmul.f32 -1.442695, %v933_v58 }
 0x1af   : > { %1996 = vpow2.f32 %v1802_v59 }
 0x1b6   : > { %v1991_v60 = vpop.eup %1990 }
 0x1b7   : > { %v950_v62 = vadd.f32 1.0, %v1991_v60 }
 0x1b8   : > { %v1993_v61 = vpop.eup %1992 }
 0x1b9   : > { %v948_v63 = vadd.f32 1.0, %v1993_v61 }
 0x1ba   : > { %v1995_v0 = vpop.eup %1994 }
 0x1bb   : > { %1998 = vrcp.f32 %v948_v63  ;;  %v951_v2 = vadd.f32 1.0, %v1995_v0 }
 0x1bc   : > { %v1997_v1 = vpop.eup %1996  ;;  %2000 = vrcp.f32 %v950_v62 }
 0x1bd   : > { %v949_v11 = vadd.f32 1.0, %v1997_v1 }
 0x1bf   : > { %2002 = vrcp.f32 %v949_v11  ;;  %v586_v11 = vsel %vm585_vm0, %v2159_v3, 0.0 }
 0x1c0   : > { %2004 = vrcp.f32 %v951_v2 }
 0x1c8   : > { %v1999_v15 = vpop.eup %1998 }
 0x1c9   : > { %v1002_v17 = vmul.f32 %v1999_v15, %v991_v16  ;;  %v2222_v18 = vpop.eup %2000  ;;  %v1030_v47 = vsub.f32 1.0, %v1999_v15  ;;  %v589_v16 = vsel %vm585_vm0, %v2161_v4, 0.0  ;;  %v2041_v4 = vmov 0.0  }
 0x1ca   : > { %v1004_v21 = vmul.f32 %v2222_v18, %v995_v20  ;;  %v1032_v54 = vsub.f32 1.0, %v2222_v18 }
 0x1cb   : > { %1010 = vrot.lane.b32.xlu0 %v1002_v17, %s2038_s1  ;;  %v1981_v17 = vld [vmem:[%s2454_s11 + $0x18] sm:$0xff]  }
 0x1cc   : > { %v2003_v19 = vpop.eup %2002  ;;  %1907 = vmatprep.subr.bf16.mxu0 %v1981_v17 }
 0x1cd   : > { %v1003_v22 = vmul.f32 %v2003_v19, %v993_v12  ;;  %v2226_v23 = vpop.eup %2004  ;;  %v592_v12 = vsel %vm585_vm0, %v2163_v5, 0.0  ;;  %1908 = vmatpush3.bf16.msra.mxu0 %v1981_v17  ;;  %v2043_v17 = vmov 0  }
 0x1ce   : > { %v1005_v25 = vmul.f32 %v2226_v23, %v997_v24  ;;  %v1033_v56 = vsub.f32 1.0, %v2226_v23  ;;  %v1982_v24 = vld [vmem:[%s2454_s11 + $0x10] sm:$0xff]  }
 0x1cf   : > { %1014 = vrot.lane.b32.xlu0 %v1004_v21, %s2038_s1  ;;  %1012 = vrot.lane.b32.xlu1 %v1003_v22, %s2038_s1 }
 0x1d0   : > { %1909 = vmatprep.subr.bf16.mxu0 %v1982_v24 }
 0x1d1   : > { %1910 = vmatpush3.bf16.msra.mxu0 %v1982_v24 }
 0x1d2   : > { %1911 = vmatprep.subr.bf16.mxu0 %v1983_v26 }
 0x1d3   : > { %1058 = vrot.lane.b32.xlu0 %v2175_v8, %s2039_s29  ;;  %1016 = vrot.lane.b32.xlu1 %v1005_v25, %s2038_s1  ;;  %s2040_s1 = smov 96  }
 0x1d5   : > { %1912 = vmatpush3.bf16.msra.mxu0 %v1983_v26 }
 0x1d7   : > { %1060 = vrot.lane.b32.xlu1 %v2177_v9, %s2039_s29 }
 0x23d   : > { %v1011_v27 = vpop.permute.xlu0 %1010 }
 0x23e   : > { %v1022_v33 = vadd.f32 %v1011_v27, %v969_v29  ;;  %v1984_v27 = vld [vmem:[%s2454_s11] sm:$0xff]  }
 0x23f   : > { %1913 = vmatprep.subr.bf16.mxu0 %v1984_v27  ;;  %v1807_v29 = vld [vmem:[%s2453_s10] ss:$0 sm:$0xff] }
 0x240   : > { %1914 = vmatpush3.bf16.msra.mxu0 %v1984_v27 }
 0x241   : > { %v1015_v30 = vpop.permute.xlu0 %1014  ;;  %v1013_v31 = vpop.permute.xlu1 %1012  ;;  %1927 = vmatprep.subr.bf16.mxu0 %v2181_v10 }
 0x242   : > { %v1024_v32 = vadd.f32 %v1015_v30, %v971_v28  ;;  %v1023_v8 = vadd.f32 %v1013_v31, %v970_v36 }
 0x244   : > { %2006 = vtanh.f32 %v1024_v32 }
 0x245   : > { %v1017_v35 = vpop.permute.xlu1 %1016  ;;  %2008 = vtanh.f32 %v1022_v33  ;;  %v1059_v43 = vpop.permute.xlu0 %1058 }
 0x246   : > { %v1025_v37 = vadd.f32 %v1017_v35, %v972_v34  ;;  %v1070_v51 = vmul.f32 %v1999_v15, %v1059_v43  ;;  %v595_v15 = vsel %vm585_vm0, %v2173_v7, 0.0 }
 0x248   : > { %2010 = vtanh.f32 %v1025_v37 }
 0x249   : > { %2012 = vtanh.f32 %v1023_v8  ;;  %v1061_v44 = vpop.permute.xlu1 %1060 }
 0x24a   : > { %v1071_v52 = vmul.f32 %v2003_v19, %v1061_v44 }
 0x251   : > { %v2007_v38 = vpop.eup %2006 }
 0x252   : > { %1042 = vrot.lane.b32.xlu0 %v2007_v38, %s2040_s1  ;;  %v2009_v9 = vpop.eup %2008 }
 0x255   : > { %v2011_v39 = vpop.eup %2010 }
 0x256   : > { %1038 = vrot.lane.b32.xlu0 %v2009_v9, %s2040_s1  ;;  %1044 = vrot.lane.b32.xlu1 %v2011_v39, %s2040_s1  ;;  %v2013_v40 = vpop.eup %2012 }
 0x25a   : > { %1062 = vrot.lane.b32.xlu0 %v2190_v13, %s2039_s29  ;;  %1040 = vrot.lane.b32.xlu1 %v2013_v40, %s2040_s1 }
 0x25e   : > { %1064 = vrot.lane.b32.xlu1 %v2192_v14, %s2039_s29  ;;  %v1031_v14 = vsub.f32 1.0, %v2003_v19 }
 0x2c4   : > { %v1043_v13 = vpop.permute.xlu0 %1042 }
 0x2c5   : > { %v1052_v60 = vmul.f32 %v1043_v13, %v1032_v54 }
 0x2c8   : > { %v1039_v45 = vpop.permute.xlu0 %1038  ;;  %v1045_v46 = vpop.permute.xlu1 %1044 }
 0x2c9   : > { %v1050_v48 = vmul.f32 %v1039_v45, %v1030_v47  ;;  %v1053_v61 = vmul.f32 %v1045_v46, %v1033_v56 }
 0x2cb   : > { %v2251_v55 = vadd.f32 %v1070_v51, %v1050_v48  ;;  %v642_v48 = vlaneseq }
 0x2cc   : > { %v1063_v49 = vpop.permute.xlu0 %1062  ;;  %v1041_v50 = vpop.permute.xlu1 %1040 }
 0x2cd   : > { %v1051_v53 = vmul.f32 %v1041_v50, %v1031_v14  ;;  %v1072_v57 = vmul.f32 %v2222_v18, %v1063_v49  ;;  %v643_v14 = vshrl.u32 %v642_v48, 7  ;;  %v652_v49 = vand.u32 127, %v642_v48 }
 0x2cf   : > { %v2255_v58 = vadd.f32 %v1071_v52, %v1051_v53  ;;  %v2260_v0 = vadd.f32 %v1072_v57, %v1052_v60  ;;  %v647_v51 = vcvt.s32.f32 %v643_v14  ;;  %v653_v52 = vcvt.s32.f32 %v652_v49 }
 0x2d0   : > { %v1065_v59 = vpop.permute.xlu1 %1064  ;;  %v644_v53 = vadd.s32 8, %v643_v14 }
 0x2d1   : > { %v1073_v62 = vmul.f32 %v2226_v23, %v1065_v59  ;;  %v1078_v63 = vpack.c.bf16 %v2255_v58, %v2251_v55  ;;  %v654_v54 = vadd.f32 0.5, %v647_v51  ;;  %v666_v56 = vadd.f32 0.5, %v653_v52 }
 0x2d2   : > { %v648_v57 = vcvt.s32.f32 %v644_v53  ;;  %v646_v59 = vadd.s32 24, %v643_v14 }
 0x2d3   : > { %v1077_v1 = vadd.f32 %v1073_v62, %v1053_v61  ;;  %1093 = vrot.lane.b32.xlu0 %v1078_v63, %s2040_s1  ;;  %v658_v61 = vmul.f32 0.25, %v654_v54  ;;  %v667_v62 = vmul.f32 0.25, %v666_v56 }
 0x2d5   : > { %v1079_v2 = vpack.c.bf16 %v1077_v1, %v2260_v0 }
 0x2d7   : > { %1095 = vrot.lane.b32.xlu1 %v1079_v2, %s2040_s1  ;;  %s2042_s1 = smov 104   ;;  %v650_v2 = vcvt.s32.f32 %v646_v59 }
 0x2f2   : > { %587 = vadd.xlane.f32.xlu0 %v586_v11 }
 0x2f6   : > { %593 = vadd.xlane.f32.xlu0 %v592_v12  ;;  %v662_v12 = vfloor.f32 %v658_v61 }
 0x2fa   : > { %596 = vadd.xlane.f32.xlu0 %v595_v15  ;;  %v693_v15 = vsub.s32 0, %v643_v14 }
 0x2fb   : > { %590 = vadd.xlane.f32.xlu1 %v589_v16  ;;  %v668_v16 = vfloor.f32 %v667_v62 }
 0x2fd   : > { %vm669_vm10 = vcmp.eq.f32.partialorder %v662_v12, %v668_v16 }
 0x345   : > { %v2276_v3 = vpop.permute.xlu0 %1093 }
 0x346   : > { %1903 = vmatprep.mubr.msk.bf16.mxu1 %vm794_vm1, %v2276_v3 }
 0x349   : > { %v2280_v5 = vpop.permute.xlu1 %1095 }
 0x34a   : > { %1904 = vmatmul.mubr.msk.bf16.vlgmr.msra.gmra.mxu1 %vm794_vm1, %v2280_v5 }
 0x37b   : > { %v588_v7 = vpop.xlane.xlu0 %587 }
 0x37c   : > { %vm598_vm2 = vcmp.gt.f32.partialorder %v588_v7, 0.0 }
 0x37d   : > { %v2285_v18 = vsel %vm598_vm2, 1.0, %v2041_v4 }
 0x37e   : > { %610 = vxpose.xlu1.b32.start [1/4] (short) (narrow) %v2285_v18, 8  ;;  %vm673_vm11 = vcmp.gt.f32.partialorder %v2285_v18, 0.5 }
 0x37f   : > { %v594_v19 = vpop.xlane.xlu0 %593  ;;  %vm685_vm13 = vmand %vm669_vm10, %vm673_vm11  ;;  %vm1695_vm11 = vcmask 589120  }
 0x380   : > { %vm600_vm4 = vcmp.gt.f32.partialorder %v594_v19, 0.0 }
 0x381   : > { %v2293_v23 = vsel %vm600_vm4, 1.0, %v2041_v4 }
 0x382   : > { %vm675_vm8 = vcmp.gt.f32.partialorder %v2293_v23, 0.5 }
 0x383   : > { %v597_v22 = vpop.xlane.xlu0 %596 }
 0x384   : > { %v591_v20 = vpop.xlane.xlu1 %590  ;;  %vm601_vm5 = vcmp.gt.f32.partialorder %v597_v22, 0.0 }
 0x385   : > { %vm599_vm3 = vcmp.gt.f32.partialorder %v591_v20, 0.0  ;;  %v2300_v25 = vsel %vm601_vm5, 1.0, %v2041_v4  ;;  %v657_v20 = vadd.f32 0.5, %v650_v2 }
 0x386   : > { %v2289_v21 = vsel %vm599_vm3, 1.0, %v2041_v4 }
 0x387   : > { %611 = vxpose.xlu1.b32.cont [2/4] (short) (narrow) %v2289_v21, 8  ;;  %v661_v26 = vmul.f32 0.25, %v657_v20  ;;  %vm674_vm15 = vcmp.gt.f32.partialorder %v2289_v21, 0.5 }
 0x38b   : > { %612 = vxpose.xlu1.b32.cont [3/4] (short) (narrow) %v2293_v23, 8  ;;  %v665_v23 = vfloor.f32 %v661_v26  ;;  %v1986_v26 = vld [vmem:[%s2458_s15] sm:$0xff]  }
 0x38f   : > { %613 = vxpose.xlu1.b32.end [4/4] (short) (narrow) %v2300_v25, 8 }
 0x3ad   : > { %1668 = vrot.lane.b32.xlu1 %v1077_v1, %s2042_s1  ;;  %v655_v1 = vadd.f32 0.5, %v648_v57 }
 0x3af   : > { %v659_v19 = vmul.f32 0.25, %v655_v1 }
 0x3b1   : > { %v663_v24 = vfloor.f32 %v659_v19 }
 0x3b3   : > { %vm670_vm3 = vcmp.eq.f32.partialorder %v663_v24, %v668_v16 }
 0x3b4   : > { %vm686_vm5 = vmand %vm670_vm3, %vm674_vm15 }
 0x3ff   : > { %v626_v63 = vpop.trf.xlu1 }
 0x400   : > { %vm689_vm7 = vcmp.gt.f32.partialorder %v626_v63, 0.5 }
 0x401   : > { %v690_v7 = vsel %vm689_vm7, 1, %v2043_v17  ;;  %vm672_vm7 = vcmp.eq.f32.partialorder %v665_v23, %v668_v16 }
 0x402   : > { %v694_v22 = vrot.slane %v690_v7, %v693_v15 }
 0x404   : > { %vm695_vm14 = vcmp.eq.s32.totalorder %v694_v22, 1 }
 0x405   : > { %vm2337_vm4 = vmand %vm685_vm13, %vm695_vm14 }
 0x40a   : > { %v1905_v28 = vpop.f32.mrf.mxu1 }
 0x40b   : > { %v1158_v31 = vadd.f32 %v1905_v28, %v1807_v29 }
 0x40c   : > { %v1149_v30 = vpop.f32.mrf.mxu1 }
 0x40d   : > { %v1150_v33 = vadd.f32 %v1807_v29, %v1149_v30  ;;  %v1166_v36 = vmax.f32 %v1158_v31, 0.0 }
 0x40e   : > { %v1906_v32 = vpop.f32.mrf.mxu1 }
 0x40f   : > { %v1161_v34 = vadd.f32 %v1906_v32, %v1807_v29  ;;  %v1164_v38 = vmax.f32 %v1150_v33, 0.0 }
 0x410   : > { %v1152_v35 = vpop.f32.mrf.mxu1 }
 0x411   : > { %v1167_v37 = vmax.f32 %v1161_v34, 0.0  ;;  %v1153_v8 = vadd.f32 %v1807_v29, %v1152_v35 }
 0x413   : > { %v1169_v9 = vpack.c.bf16 %v1167_v37, %v1166_v36  ;;  %v1165_v39 = vmax.f32 %v1153_v8, 0.0 }
 0x415   : > { %v1168_v40 = vpack.c.bf16 %v1165_v39, %v1164_v38  ;;  %1957 = vmatprep.subr.msk.bf16.mxu1 %vm1202_vm6, %v1169_v9  ;;  %v1207_v41 = vsel %vm1202_vm6, %v1169_v9, 0 }
 0x416   : > { %1920 = vmatpush3.bf16.xpose.msra.mxu1 %v1207_v41 }
 0x417   : > { %1915 = vmatprep.mubr.msk.bf16.mxu0 %vm1202_vm6, %v1168_v40  ;;  %1958 = vmatprep.subr.msk.bf16.mxu1 %vm1202_vm6, %v1168_v40  ;;  %v1204_v42 = vsel %vm1202_vm6, %v1168_v40, 0 }
 0x418   : > { %1916 = vmatmul.mubr.msk.bf16.vlgmr.msra.gmra.mxu0 %vm1202_vm6, %v1169_v9 }
 0x419   : > { %1928 = vmatpush3.bf16.msra.mxu0 %v2181_v10  ;;  %v645_v10 = vadd.s32 16, %v643_v14 }
 0x41a   : > { %1929 = vmatprep.subr.bf16.mxu0 %v2171_v6 }
 0x41b   : > { %v649_v50 = vcvt.s32.f32 %v645_v10 }
 0x41d   : > { %1930 = vmatpush3.bf16.msra.mxu0 %v2171_v6  ;;  %v656_v6 = vadd.f32 0.5, %v649_v50 }
 0x41e   : > { %1922 = vmatpush3.bf16.xpose.msra.mxu1 %v1204_v42 }
 0x41f   : > { %v660_v60 = vmul.f32 0.25, %v656_v6 }
 0x421   : > { %v664_v11 = vfloor.f32 %v660_v60  ;;  %v1985_v60 = vld [vmem:[%s2458_s15 + $0x8] sm:$0xff]  }
 0x422   : > { %1941 = vmatprep.subr.bf16.mxu0 %v1985_v60 }
 0x423   : > { %vm671_vm9 = vcmp.eq.f32.partialorder %v664_v11, %v668_v16 }
 0x424   : > { %vm687_vm12 = vmand %vm671_vm9, %vm675_vm8 }
 0x425   : > { %vm2329_vm2 = vmand %vm687_vm12, %vm695_vm14  ;;  %vm1700_vm12 = vcmask 1048128  }
 0x426   : > { %vm2346_vm8 = vmand %vm686_vm5, %vm695_vm14 }
 0x4d8   : > { %v1917_v43 = vpop.f32.mrf.mxu0 }
 0x4da   : > { %v1243_v44 = vpop.f32.mrf.mxu0 }
 0x4dc   : > { %v1918_v13 = vpop.f32.mrf.mxu0 }
 0x4dd   : > { %v1259_v47 = vpack.c.bf16 %v1918_v13, %v1917_v43 }
 0x4de   : > { %v1246_v45 = vpop.f32.mrf.mxu0 }
 0x4df   : > { %v1258_v46 = vpack.c.bf16 %v1246_v45, %v1243_v44 }
 0x4e1   : > { %1923 = vmatprep.mubr.msk.bf16.mxu1 %vm1202_vm6, %v1258_v46 }
 0x4e2   : > { %1924 = vmatmul.mubr.msk.bf16.vlgmr.msra.gmra.mxu1 %vm1202_vm6, %v1259_v47  ;;  %vm676_vm6 = vcmp.gt.f32.partialorder %v2300_v25, 0.5 }
 0x4e3   : > { %vm688_vm9 = vmand %vm672_vm7, %vm676_vm6 }
 0x4e4   : > { %vm2354_vm10 = vmand %vm688_vm9, %vm695_vm14 }
 0x5a2   : > { %v1925_v27 = vpop.f32.mrf.mxu1 }
 0x5a3   : > { %v1317_v28 = vmul.f32 0.125, %v1925_v27  ;;  %v1987_v27 = vld [vmem:[%s2455_s12] sm:$0xff]  }
 0x5a4   : > { %v1300_v29 = vpop.f32.mrf.mxu1  ;;  %1935 = vmatprep.subr.bf16.mxu1 %v1987_v27 }
 0x5a5   : > { %v1315_v31 = vmul.f32 0.125, %v1300_v29  ;;  %v1321_v18 = vsel %vm2329_vm2, %v1317_v28, -1e+10  ;;  %1936 = vmatpush3.bf16.msra.mxu1 %v1987_v27 }
 0x5a6   : > { %v1926_v32 = vpop.f32.mrf.mxu1  ;;  %v1329_v33 = vsel %vm794_vm1, %v1321_v18, -inf }
 0x5a7   : > { %1330 = vmax.xlane.f32.xlu0 %v1329_v33  ;;  %v1319_v21 = vsel %vm2337_vm4, %v1315_v31, -1e+10  ;;  %v1318_v38 = vmul.f32 0.125, %v1926_v32  ;;  %v1822_v32 = vld [vmem:[%s2456_s13] ss:$0 sm:$0xff] }
 0x5a8   : > { %v1303_v35 = vpop.f32.mrf.mxu1  ;;  %v1323_v37 = vsel %vm794_vm1, %v1319_v21, -inf }
 0x5a9   : > { %v1316_v36 = vmul.f32 0.125, %v1303_v35  ;;  %v1322_v40 = vsel %vm2354_vm10, %v1318_v38, -1e+10 }
 0x5aa   : > { %v1332_v41 = vsel %vm794_vm1, %v1322_v40, -inf }
 0x5ab   : > { %1324 = vmax.xlane.f32.xlu0 %v1323_v37  ;;  %v1320_v9 = vsel %vm2346_vm8, %v1316_v36, -1e+10 }
 0x5ac   : > { %v1326_v39 = vsel %vm794_vm1, %v1320_v9, -inf }
 0x5af   : > { %1327 = vmax.xlane.f32.xlu0 %v1326_v39 }
 0x5b3   : > { %1333 = vmax.xlane.f32.xlu0 %v1332_v41 }
 0x630   : > { %v1331_v42 = vpop.xlane.xlu0 %1330 }
 0x631   : > { %v1337_v43 = vsub.f32 %v1321_v18, %v1331_v42 }
 0x633   : > { %v1343_v44 = vmul.f32 1.442695, %v1337_v43 }
 0x634   : > { %v1325_v13 = vpop.xlane.xlu0 %1324 }
 0x635   : > { %2014 = vpow2.f32 %v1343_v44  ;;  %v1335_v45 = vsub.f32 %v1319_v21, %v1325_v13 }
 0x637   : > { %v1339_v46 = vmul.f32 1.442695, %v1335_v45 }
 0x638   : > { %v1328_v47 = vpop.xlane.xlu0 %1327 }
 0x639   : > { %2016 = vpow2.f32 %v1339_v46  ;;  %v1336_v48 = vsub.f32 %v1320_v9, %v1328_v47 }
 0x63b   : > { %v1341_v14 = vmul.f32 1.442695, %v1336_v48 }
 0x63c   : > { %v1334_v10 = vpop.xlane.xlu0 %1333 }
 0x63d   : > { %2018 = vpow2.f32 %v1341_v14  ;;  %v1338_v49 = vsub.f32 %v1322_v40, %v1334_v10 }
 0x63f   : > { %v1345_v50 = vmul.f32 1.442695, %v1338_v49 }
 0x641   : > { %2020 = vpow2.f32 %v1345_v50  ;;  %v1834_v50 = vld [vmem:[%s2459_s16] ss:$0 sm:$0xff] }
 0x642   : > { %v2015_v51 = vpop.eup %2014 }
 0x643   : > { %v1353_v52 = vsel %vm794_vm1, %v2015_v51, 0.0 }
 0x644   : > { %1354 = vadd.xlane.f32.xlu0 %v1353_v52 }
 0x646   : > { %v2017_v53 = vpop.eup %2016 }
 0x647   : > { %v1347_v6 = vsel %vm794_vm1, %v2017_v53, 0.0 }
 0x648   : > { %1348 = vadd.xlane.f32.xlu0 %v1347_v6 }
 0x64a   : > { %v2019_v54 = vpop.eup %2018 }
 0x64b   : > { %v1350_v56 = vsel %vm794_vm1, %v2019_v54, 0.0 }
 0x64c   : > { %1351 = vadd.xlane.f32.xlu0 %v1350_v56 }
 0x64e   : > { %v2021_v57 = vpop.eup %2020 }
 0x64f   : > { %v1356_v59 = vsel %vm794_vm1, %v2021_v57, 0.0 }
 0x650   : > { %1357 = vadd.xlane.f32.xlu0 %v1356_v59 }
 0x666   : > { %1662 = vrot.lane.b32.xlu0 %v2251_v55, %s2042_s1 }
 0x66a   : > { %1664 = vrot.lane.b32.xlu0 %v2255_v58, %s2042_s1 }
 0x66e   : > { %1666 = vrot.lane.b32.xlu0 %v2260_v0, %s2042_s1 }
 0x6cd   : > { %v1355_v61 = vpop.xlane.xlu0 %1354 }
 0x6d1   : > { %v1349_v62 = vpop.xlane.xlu0 %1348 }
 0x6d2   : > { %2022 = vrcp.f32 %v1349_v62 }
 0x6d3   : > { %2024 = vrcp.f32 %v1355_v61 }
 0x6d5   : > { %v1352_v63 = vpop.xlane.xlu0 %1351 }
 0x6d6   : > { %2026 = vrcp.f32 %v1352_v63 }
 0x6d9   : > { %v1358_v1 = vpop.xlane.xlu0 %1357 }
 0x6da   : > { %2028 = vrcp.f32 %v1358_v1  ;;  %v1669_v1 = vpop.permute.xlu1 %1668 }
 0x6dd   : > { %v1663_v43 = vpop.permute.xlu0 %1662 }
 0x6df   : > { %v2023_v55 = vpop.eup %2022 }
 0x6e0   : > { %v2025_v2 = vpop.eup %2024  ;;  %v1363_v11 = vmul.f32 %v2023_v55, %v2017_v53 }
 0x6e1   : > { %v1365_v15 = vmul.f32 %v2025_v2, %v2015_v51  ;;  %v1665_v44 = vpop.permute.xlu0 %1664 }
 0x6e2   : > { %v1367_v16 = vsel %vm2337_vm4, %v1363_v11, 0.0 }
 0x6e3   : > { %v2027_v58 = vpop.eup %2026  ;;  %v1369_v20 = vsel %vm2329_vm2, %v1365_v15, 0.0 }
 0x6e4   : > { %v1364_v12 = vmul.f32 %v2027_v58, %v2019_v54 }
 0x6e5   : > { %v1667_v46 = vpop.permute.xlu0 %1666 }
 0x6e6   : > { %v1368_v0 = vsel %vm2346_vm8, %v1364_v12, 0.0 }
 0x6e7   : > { %v2029_v17 = vpop.eup %2028  ;;  %v1371_v7 = vpack.c.bf16 %v1368_v0, %v1367_v16 }
 0x6e8   : > { %v1366_v19 = vmul.f32 %v2029_v17, %v2021_v57 }
 0x6e9   : > { %1931 = vmatprep.mubr.msk.bf16.mxu0 %vm794_vm1, %v1371_v7 }
 0x6ea   : > { %v1370_v22 = vsel %vm2354_vm10, %v1366_v19, 0.0 }
 0x6eb   : > { %v1372_v24 = vpack.c.bf16 %v1370_v22, %v1369_v20 }
 0x6ed   : > { %1932 = vmatmul.mubr.msk.bf16.vlgmr.msra.gmra.mxu0 %vm794_vm1, %v1372_v24 }
 0x6ee   : > { %1942 = vmatpush3.bf16.msra.mxu0 %v1985_v60  ;;  %1945 = vmatprep.mubr.msk.bf16.mxu0 %vm794_vm1, %v2276_v3  ;;  %v1988_v3 = vld [vmem:[%s2457_s14 + $0x8] sm:$0xff]  }
 0x6ef   : > { %1943 = vmatprep.subr.bf16.mxu0 %v1986_v26  ;;  %1949 = vmatprep.subr.bf16.mxu1 %v1988_v3 }
 0x6f2   : > { %1944 = vmatpush3.bf16.msra.mxu0 %v1986_v26 }
 0x6f5   : > { %1946 = vmatmul.mubr.msk.bf16.vlgmr.msra.gmra.mxu0 %vm794_vm1, %v2280_v5  ;;  %v1989_v5 = vld [vmem:[%s2457_s14] sm:$0xff]  }
 0x7ad   : > { %v1933_v28 = vpop.f32.mrf.mxu0 }
 0x7af   : > { %v1413_v29 = vpop.f32.mrf.mxu0 }
 0x7b1   : > { %v1934_v30 = vpop.f32.mrf.mxu0 }
 0x7b2   : > { %v1429_v18 = vpack.c.bf16 %v1934_v30, %v1933_v28 }
 0x7b3   : > { %v1416_v23 = vpop.f32.mrf.mxu0 }
 0x7b4   : > { %v1428_v31 = vpack.c.bf16 %v1416_v23, %v1413_v29 }
 0x7b5   : > { %v1947_v13 = vpop.f32.mrf.mxu0 }
 0x7b6   : > { %1937 = vmatprep.mubr.msk.bf16.mxu1 %vm585_vm0, %v1428_v31 }
 0x7b7   : > { %1938 = vmatmul.mubr.msk.bf16.vlgmr.msra.gmra.mxu1 %vm585_vm0, %v1429_v18  ;;  %v1560_v45 = vpop.f32.mrf.mxu0  ;;  %vm1653_vm0 = vcmask 64512  }
 0x7b8   : > { %1950 = vmatpush3.bf16.msra.mxu1 %v1988_v3 }
 0x7b9   : > { %1951 = vmatprep.subr.bf16.mxu1 %v1989_v5  ;;  %v1948_v48 = vpop.f32.mrf.mxu0 }
 0x7bb   : > { %v1563_v53 = vpop.f32.mrf.mxu0 }
 0x7bc   : > { %1952 = vmatpush3.bf16.msra.mxu1 %v1989_v5 }
 0x877   : > { %v1939_v33 = vpop.f32.mrf.mxu1 }
 0x878   : > { %v1494_v34 = vadd.f32 %v1939_v33, %v1822_v32 }
 0x879   : > { %v1485_v21 = vpop.f32.mrf.mxu1 }
 0x87a   : > { %v1502_v35 = vmax.f32 %v1494_v34, 0.0  ;;  %v1486_v36 = vadd.f32 %v1822_v32, %v1485_v21 }
 0x87b   : > { %v1940_v37 = vpop.f32.mrf.mxu1 }
 0x87c   : > { %v1497_v8 = vadd.f32 %v1940_v37, %v1822_v32  ;;  %1687 = vrot.lane.b32.xlu0 %v1502_v35, %s2044_s30  ;;  %v1500_v9 = vmax.f32 %v1486_v36, 0.0 }
 0x87d   : > { %v1488_v38 = vpop.f32.mrf.mxu1 }
 0x87e   : > { %v1489_v39 = vadd.f32 %v1822_v32, %v1488_v38  ;;  %v1503_v25 = vmax.f32 %v1497_v8, 0.0 }
 0x880   : > { %v1501_v40 = vmax.f32 %v1489_v39, 0.0  ;;  %1683 = vrot.lane.b32.xlu0 %v1500_v9, %s2044_s30  ;;  %v1505_v42 = vpack.c.bf16 %v1503_v25, %v1502_v35 }
 0x882   : > { %v1504_v41 = vpack.c.bf16 %v1501_v40, %v1500_v9 }
 0x884   : > { %1685 = vrot.lane.b32.xlu0 %v1501_v40, %s2044_s30  ;;  %1953 = vmatprep.mubr.msk.bf16.mxu1 %vm794_vm1, %v1504_v41 }
 0x885   : > { %1954 = vmatmul.mubr.msk.bf16.vlgmr.msra.gmra.mxu1 %vm794_vm1, %v1505_v42  ;;  %vm1674_vm1 = vcmask 326720  }
 0x888   : > { %1689 = vrot.lane.b32.xlu0 %v1503_v25, %s2044_s30 }
 0x8ee   : > { %v1688_v14 = vpop.permute.xlu0 %1687 }
 0x8f2   : > { %v1684_v59 = vpop.permute.xlu0 %1683 }
 0x8f6   : > { %v1686_v63 = vpop.permute.xlu0 %1685 }
 0x8fa   : > { %v1690_v55 = vpop.permute.xlu0 %1689 }
 0x945   : > { %v1955_v47 = vpop.f32.mrf.mxu1 }
 0x946   : > { %v1636_v6 = vadd.f32 %v1955_v47, %v1947_v13 }
 0x947   : > { %v1627_v10 = vpop.f32.mrf.mxu1 }
 0x948   : > { %v1628_v49 = vadd.f32 %v1627_v10, %v1560_v45  ;;  %v1651_v61 = vadd.f32 %v1834_v50, %v1636_v6 }
 0x949   : > { %v1956_v51 = vpop.f32.mrf.mxu1 }
 0x94a   : > { %v1649_v52 = vadd.f32 %v1834_v50, %v1628_v49  ;;  %v1639_v56 = vadd.f32 %v1956_v51, %v1948_v48  ;;  %1656 = vst.msk [vmem:[%s2411_s21 + $0x10] sm:$0xff] %vm1653_vm0, %v1651_v61 }
 0x94b   : > { %v1630_v54 = vpop.f32.mrf.mxu1  ;;  %1677 = vst.msk [vmem:[%s2411_s21 + $0x10] sm:$0xff] %vm1674_vm1, %v1667_v46 }
 0x94c   : > { %1654 = vst.msk [vmem:[%s2411_s21] sm:$0xff] %vm1653_vm0, %v1649_v52  ;;  %v1631_v57 = vadd.f32 %v1630_v54, %v1563_v53  ;;  %v1652_v62 = vadd.f32 %v1834_v50, %v1639_v56 }
 0x94d   : > { %1675 = vst.msk [vmem:[%s2411_s21] sm:$0xff] %vm1674_vm1, %v1663_v43 }
 0x94e   : > { %v1650_v60 = vadd.f32 %v1834_v50, %v1631_v57  ;;  %1657 = vst.msk [vmem:[%s2411_s21 + $0x18] sm:$0xff] %vm1653_vm0, %v1652_v62 }
 0x94f   : > { %1678 = vst.msk [vmem:[%s2411_s21 + $0x18] sm:$0xff] %vm1674_vm1, %v1669_v1 }
 0x950   : > { %1655 = vst.msk [vmem:[%s2411_s21 + $0x8] sm:$0xff] %vm1653_vm0, %v1650_v60 }
 0x951   : > { %1676 = vst.msk [vmem:[%s2411_s21 + $0x8] sm:$0xff] %vm1674_vm1, %v1665_v44 }
 0x952   : > { %1696 = vst.msk [vmem:[%s2411_s21] sm:$0xff] %vm1695_vm11, %v1684_v59  ;;  %1697 = vst.msk [vmem:[%s2411_s21 + $0x8] sm:$0xff] %vm1695_vm11, %v1686_v63 }
 0x953   : > { %1698 = vst.msk [vmem:[%s2411_s21 + $0x10] sm:$0xff] %vm1695_vm11, %v1688_v14  ;;  %1699 = vst.msk [vmem:[%s2411_s21 + $0x18] sm:$0xff] %vm1695_vm11, %v1690_v55 }
 0x954   : > { %1701 = vst.msk [vmem:[%s2411_s21] sm:$0xff] %vm1700_vm12, %v2041_v4  ;;  %1702 = vst.msk [vmem:[%s2411_s21 + $0x8] sm:$0xff] %vm1700_vm12, %v2041_v4 }
 0x955   : > { %1703 = vst.msk [vmem:[%s2411_s21 + $0x10] sm:$0xff] %vm1700_vm12, %v2041_v4  ;;  %1704 = vst.msk [vmem:[%s2411_s21 + $0x18] sm:$0xff] %vm1700_vm12, %v2041_v4 }
 0x956 PF: > { %s27_s24 = sadd.s32 1, %s2036_s24  }
 0x957   : > { %p24_p4 = scmp.ge.s32.totalorder %s27_s24, 4  }
 0x959   :  { %26 = sbr.rel (!%p24_p4) target bundleno = 3 (0x3), region = 121 }

</bundles_post_ra>
